<compile_context>
chip_gen: v7x
topology: tpu7x:2x2x1
jax: 0.10.0
libtpu: 0.0.40
codegen_flags: <defaults>
</compile_context>

<pallas_src>
import jax
import jax.numpy as jnp
from jax.experimental import pallas as pl
from jax.experimental.pallas import tpu as pltpu

LANE = 128


def _round_up(n: int, m: int) -> int:
    return ((n + m - 1) // m) * m


def coxph_kernel(x_ref, w1t_ref, b1_ref, alpha_ref, w2_ref, b2_ref, o_ref):
    """One batch tile of the early-fusion CoxPH MLP.

    x:     (TILE_B, F)  bf16   current batch tile (VMEM, pipelined)
    w1t:   (H, F)       bf16   layer-1 weight, PyTorch (out,in) layout (VMEM, resident)
    b1:    (H, 1)       f32    layer-1 bias as a column (VMEM, resident)
    alpha: (1, 1)       f32    PReLU slope (SMEM scalar)
    w2:    (H, 1)       f32    output-head weight as a column (VMEM, resident)
    b2:    (1, 1)       f32    output-head bias (SMEM scalar)
    o:     (1, TILE_B)  f32    lane-dense log-hazard row for this tile
    """
    x = x_ref[...]  # (TILE_B, F) bf16

    # hT[h, b] = sum_f w1t[h, f] * x[b, f] -- contraction over the shared last dims
    # (same pattern as q @ k^T).  Keeps the batch on the lane axis so all downstream
    # element-wise work and the final store are lane-dense.  bf16 inputs, f32 accumulate.
    ht = jax.lax.dot_general(
        w1t_ref[...], x,
        dimension_numbers=(((1,), (1,)), ((), ())),
        preferred_element_type=jnp.float32,
    )                                    # (H, TILE_B) f32
    ht = ht + b1_ref[...]                # (H, 1) broadcast along lanes

    # PReLU with a single shared alpha: x if x > 0 else alpha * x  (cmp + mul + select).
    alpha = alpha_ref[0, 0]
    ht = jnp.where(ht > 0.0, ht, alpha * ht)

    # dropout with p = 0.0 (eval) is the identity -> nothing to do.

    # Output head (H -> 1) as a VPU multiply + sublane reduction instead of a degenerate
    # N=1 MXU matmul; the result is already a lane-dense (1, TILE_B) row.
    out_row = jnp.sum(ht * w2_ref[...], axis=0, keepdims=True) + b2_ref[0, 0]
    o_ref[...] = out_row.astype(o_ref.dtype)   # (1, TILE_B)


def coxph_forward(x, params, *, tile_b: int = 4096):
    """Early-fusion CoxPH forward.  x: (B, F) float32 -> (B, 1) float32."""
    w1t, b1, alpha, w2, b2 = (
        params["w1t"], params["b1"], params["alpha"], params["w2"], params["b2"]
    )
    B, F = x.shape
    H = w1t.shape[0]

    # bf16 for the two MXU inputs; x is the only large HBM stream (halved bandwidth),
    # and bf16 is the MXU's native input width.  Accumulation stays f32 in the kernel.
    x = x.astype(jnp.bfloat16)
    w1t = w1t.astype(jnp.bfloat16)

    # --- batch tile selection -------------------------------------------------------
    #  * multiple of 128 lanes: unmasked output stores, full-width MXU N, bf16 packing
    #  * at least 2 grid steps when B allows (shard the parallel axis over both v7x TCs)
    #  * capped at 8192: the F=16 tile lane-pads to 128 in VMEM (8x HBM footprint)
    tile_cap = _round_up(min(max(tile_b, LANE), 8192), LANE)
    b128 = _round_up(B, LANE)
    half = _round_up(pl.cdiv(b128, 2), LANE)
    tile = max(LANE, min(tile_cap, half))
    b_pad = _round_up(B, tile)
    num_tiles = b_pad // tile

    if b_pad != B:
        x = jnp.pad(x, ((0, b_pad - B), (0, 0)))

    # Derived VMEM budget from the actual (padded) tile footprints + headroom.
    f_pad = _round_up(F, LANE)
    vmem_bytes = (
        2 * (2 * tile * f_pad)        # x tile: bf16, 2 buffers, lane-padded
        + 2 * (4 * 8 * tile)          # (1, tile) f32 output row: 2 buffers, sublane-padded
        + 2 * (2 * H * f_pad)         # w1t: bf16, 2 buffers, lane-padded
        + 4 * (4 * H * LANE)          # b1 / w2: f32, 2 buffers each, lane-padded
    )
    vmem_bytes += 2 << 20             # headroom

    out = pl.pallas_call(
        coxph_kernel,
        out_shape=jax.ShapeDtypeStruct((1, b_pad), jnp.float32),
        grid=(num_tiles,),
        in_specs=[
            pl.BlockSpec((tile, F), lambda i: (i, 0)),            # x: pipelined batch tiles
            pl.BlockSpec((H, F), lambda i: (0, 0)),               # w1t: VMEM-resident
            pl.BlockSpec((H, 1), lambda i: (0, 0)),               # b1
            pl.BlockSpec(memory_space=pltpu.MemorySpace.SMEM),    # alpha (SMEM scalar)
            pl.BlockSpec((H, 1), lambda i: (0, 0)),               # w2
            pl.BlockSpec(memory_space=pltpu.MemorySpace.SMEM),    # b2 (SMEM scalar)
        ],
        out_specs=pl.BlockSpec((1, tile), lambda i: (0, i)),      # lane-dense row blocks
        compiler_params=pltpu.CompilerParams(
            dimension_semantics=("parallel",),
            vmem_limit_bytes=int(vmem_bytes),
        ),
    )(x, w1t, b1, alpha, w2, b2)

    # (1, b_pad) is in original batch order along lanes; drop padding rows.
    return out.reshape(b_pad, 1)[:B]


def init_params(key, in_dim, hidden_dim):
    """Deterministic synthetic init matching HazardRegression parameter shapes
    (nn.Linear weight layout is (out_features, in_features))."""
    k1, k2, k3, k4 = jax.random.split(key, 4)
    scale1 = 1.0 / jnp.sqrt(jnp.float32(in_dim))
    scale2 = 1.0 / jnp.sqrt(jnp.float32(hidden_dim))
    return {
        "w1t": jax.random.normal(k1, (hidden_dim, in_dim), jnp.float32) * scale1,   # (H, F)
        "b1": jax.random.normal(k2, (hidden_dim, 1), jnp.float32) * scale1,         # (H, 1)
        "alpha": jnp.full((1, 1), 0.25, jnp.float32),   # nn.PReLU default init
        "w2": jax.random.normal(k3, (hidden_dim, 1), jnp.float32) * scale2,          # (H, 1)
        "b2": jax.random.normal(k4, (1, 1), jnp.float32) * scale2,
    }


def coxph_reference(x, p):
    """Plain-JAX reference matching the kernel's numerics (bf16 x / W1, f32 accumulate)."""
    xb = x.astype(jnp.bfloat16).astype(jnp.float32)
    w1 = p["w1t"].astype(jnp.bfloat16).astype(jnp.float32)
    h = xb @ w1.T + p["b1"].reshape(1, -1)
    h = jnp.where(h > 0.0, h, p["alpha"][0, 0] * h)
    return h @ p["w2"] + p["b2"][0, 0]


if __name__ == "__main__":
    # blocks = [10 features, 6 features] -> early fusion concat -> F = 16
    BLOCK_SIZES = (10, 6)
    F = sum(BLOCK_SIZES)
    HIDDEN = 64  # log_hazard_hidden_layer_size // (1 + 0) for 'early'

    key = jax.random.PRNGKey(0)
    kx, kp = jax.random.split(key)
    params = init_params(kp, F, HIDDEN)

    # --- small case (single 128-row tile, batch padded 8 -> 128) ---
    B = 8
    block_a = jax.random.normal(kx, (B, BLOCK_SIZES[0]), jnp.float32)
    block_b = jax.random.normal(jax.random.fold_in(kx, 1), (B, BLOCK_SIZES[1]), jnp.float32)
    x = jnp.concatenate([block_a, block_b], axis=-1)   # early fusion (concat)

    out = jax.block_until_ready(coxph_forward(x, params))
    ref = coxph_reference(x, params)
    assert out.shape == (B, 1)
    assert jnp.allclose(out, ref, atol=2e-3, rtol=2e-3), (out, ref)

    # --- multi-tile case: 2 grid steps (200 -> 2 x 128), exercises padding + parallel axis ---
    B2 = 200
    x2 = jax.random.normal(jax.random.fold_in(kx, 2), (B2, F), jnp.float32)
    out2 = jax.block_until_ready(coxph_forward(x2, params))
    ref2 = coxph_reference(x2, params)
    assert out2.shape == (B2, 1)
    assert jnp.allclose(out2, ref2, atol=2e-3, rtol=2e-3)

    print("KERNEL_OK")
</pallas_src>

<mosaic_0001>
module attributes {stable_mosaic.version = 11 : i64} {
  func.func @coxph_kernel(%arg0: i32, %arg1: memref<128x16xbf16, #tpu.memory_space<vmem>>, %arg2: memref<64x16xbf16, #tpu.memory_space<vmem>>, %arg3: memref<64x1xf32, #tpu.memory_space<vmem>>, %arg4: memref<1x1xf32, #tpu.memory_space<smem>>, %arg5: memref<64x1xf32, #tpu.memory_space<vmem>>, %arg6: memref<1x1xf32, #tpu.memory_space<smem>>, %arg7: memref<1x128xf32, #tpu.memory_space<vmem>>) attributes {dimension_semantics = [#tpu.dimension_semantics<parallel>], iteration_bounds = array<i64: 1>, scalar_prefetch = 0 : i64, scratch_operands = 0 : i64, tpu.core_type = #tpu.core_type<tc>, window_params = [{transform_indices = @transform_0, window_bounds = array<i64: 128, 16>}, {pipeline_mode = #tpu.pipeline_mode<synchronous>, transform_indices = @transform_1, window_bounds = array<i64: 64, 16>}, {pipeline_mode = #tpu.pipeline_mode<synchronous>, transform_indices = @transform_2, window_bounds = array<i64: 64, 1>}, {transform_indices = @transform_3, window_bounds = array<i64: 1, 1>}, {pipeline_mode = #tpu.pipeline_mode<synchronous>, transform_indices = @transform_4, window_bounds = array<i64: 64, 1>}, {transform_indices = @transform_5, window_bounds = array<i64: 1, 1>}, {transform_indices = @transform_6, window_bounds = array<i64: 1, 128>}]} {
    %c0 = arith.constant 0 : index
    %c0_0 = arith.constant 0 : index
    %0 = vector.load %arg1[%c0, %c0_0] : memref<128x16xbf16, #tpu.memory_space<vmem>>, vector<128x16xbf16>
    %c0_1 = arith.constant 0 : index
    %c0_2 = arith.constant 0 : index
    %1 = vector.load %arg2[%c0_1, %c0_2] : memref<64x16xbf16, #tpu.memory_space<vmem>>, vector<64x16xbf16>
    %cst = arith.constant dense<0.000000e+00> : vector<64x128xf32>
    %2 = tpu.matmul %1, %0, %cst {dimension_numbers = #tpu.dot_dimension_numbers<[1], [1], [0], [0], [0, 0, 1, 0], [], []>} : vector<64x16xbf16>, vector<128x16xbf16>, vector<64x128xf32> -> vector<64x128xf32>
    %c0_3 = arith.constant 0 : index
    %c0_4 = arith.constant 0 : index
    %3 = vector.load %arg3[%c0_3, %c0_4] : memref<64x1xf32, #tpu.memory_space<vmem>>, vector<64x1xf32>
    %4 = vector.broadcast %3 : vector<64x1xf32> to vector<64x128xf32>
    %5 = arith.addf %2, %4 : vector<64x128xf32>
    %c0_5 = arith.constant 0 : index
    %c0_6 = arith.constant 0 : index
    %6 = memref.load %arg4[%c0_5, %c0_6] : memref<1x1xf32, #tpu.memory_space<smem>>
    %cst_7 = arith.constant 0.000000e+00 : f32
    %7 = vector.broadcast %cst_7 : f32 to vector<64x128xf32>
    %8 = arith.cmpf ogt, %5, %7 : vector<64x128xf32>
    %9 = vector.broadcast %6 : f32 to vector<64x128xf32>
    %10 = arith.mulf %9, %5 : vector<64x128xf32>
    %11 = arith.select %8, %5, %10 : vector<64x128xi1>, vector<64x128xf32>
    %c0_8 = arith.constant 0 : index
    %c0_9 = arith.constant 0 : index
    %12 = vector.load %arg5[%c0_8, %c0_9] : memref<64x1xf32, #tpu.memory_space<vmem>>, vector<64x1xf32>
    %13 = vector.broadcast %12 : vector<64x1xf32> to vector<64x128xf32>
    %14 = arith.mulf %11, %13 : vector<64x128xf32>
    %cst_10 = arith.constant dense<0.000000e+00> : vector<128xf32>
    %15 = vector.multi_reduction <add>, %14, %cst_10 [0] : vector<64x128xf32> to vector<128xf32>
    %16 = vector.shape_cast %15 : vector<128xf32> to vector<1x128xf32>
    %c0_11 = arith.constant 0 : index
    %c0_12 = arith.constant 0 : index
    %17 = memref.load %arg6[%c0_11, %c0_12] : memref<1x1xf32, #tpu.memory_space<smem>>
    %18 = vector.broadcast %17 : f32 to vector<1x128xf32>
    %19 = arith.addf %16, %18 : vector<1x128xf32>
    %c0_13 = arith.constant 0 : index
    %c0_14 = arith.constant 0 : index
    %20 = vector.load %arg7[%c0_13, %c0_14] : memref<1x128xf32, #tpu.memory_space<vmem>>, vector<1x128xf32>
    tpu.vector_store %arg7[%c0_13, %c0_14], %19 {strides = array<i32>} : memref<1x128xf32, #tpu.memory_space<vmem>>, vector<1x128xf32>,
    return
  }
  func.func @transform_0(%arg0: i32) -> (i32, i32) {
    %c0_i32 = arith.constant 0 : i32
    %c0_i32_0 = arith.constant 0 : i32
    return %arg0, %c0_i32 : i32, i32
  }
  func.func @transform_1(%arg0: i32) -> (i32, i32) {
    %c0_i32 = arith.constant 0 : i32
    %c0_i32_0 = arith.constant 0 : i32
    %c0_i32_1 = arith.constant 0 : i32
    return %c0_i32, %c0_i32_0 : i32, i32
  }
  func.func @transform_2(%arg0: i32) -> (i32, i32) {
    %c0_i32 = arith.constant 0 : i32
    %c0_i32_0 = arith.constant 0 : i32
    %c0_i32_1 = arith.constant 0 : i32
    return %c0_i32, %c0_i32_0 : i32, i32
  }
  func.func @transform_3(%arg0: i32) -> (i32, i32) {
    %c0_i32 = arith.constant 0 : i32
    %c0_i32_0 = arith.constant 0 : i32
    %c0_i32_1 = arith.constant 0 : i32
    return %c0_i32, %c0_i32_0 : i32, i32
  }
  func.func @transform_4(%arg0: i32) -> (i32, i32) {
    %c0_i32 = arith.constant 0 : i32
    %c0_i32_0 = arith.constant 0 : i32
    %c0_i32_1 = arith.constant 0 : i32
    return %c0_i32, %c0_i32_0 : i32, i32
  }
  func.func @transform_5(%arg0: i32) -> (i32, i32) {
    %c0_i32 = arith.constant 0 : i32
    %c0_i32_0 = arith.constant 0 : i32
    %c0_i32_1 = arith.constant 0 : i32
    return %c0_i32, %c0_i32_0 : i32, i32
  }
  func.func @transform_6(%arg0: i32) -> (i32, i32) {
    %c0_i32 = arith.constant 0 : i32
    %c0_i32_0 = arith.constant 0 : i32
    return %c0_i32, %arg0 : i32, i32
  }
}

</mosaic_0001>

<bundles_post_ra>
// kernel: tpu_custom_call.1
= control target key start
LH: loop header
LB: loop body
LE: loop exit
PB: predicated region body
PF: predicated region fallthrough
CT: control target
= control target key end

     0   :  { %vm159_vm0 = vcmask 130048   ;;  %v498_v3 = vmov 0   ;;  %s665_s0 = inlined_call_operand.vmem [shape: bf16[128,16], index: 0, kind: input, shape index: {}]   ;;  %s666_s1 = inlined_call_operand.vmem [shape: bf16[64,16], index: 1, kind: input, shape index: {}]   ;;  %s667_s2 = inlined_call_operand.vmem [shape: f32[64,1], index: 2, kind: input, shape index: {}]   ;;  %s668_s3 = inlined_call_operand.<no memory space> [shape: f32[1,1], index: 3, kind: input, shape index: {}]   ;;  %s669_s4 = inlined_call_operand.vmem [shape: f32[64,1], index: 4, kind: input, shape index: {}]   ;;  %s670_s5 = inlined_call_operand.<no memory space> [shape: f32[1,1], index: 5, kind: input, shape index: {}]   ;;  %s671_s6 = inlined_call_operand.hbm [shape: f32[1,128], index: 6, kind: output, shape index: {}]  }
   0x1   :  { %v462_v0 = vld [vmem:[%s665_s0] sm:$0xff]   ;;  %v463_v1 = vld [vmem:[%s665_s0 + $0x8] sm:$0xff]   ;;  %460 = vset.pattern.permute.xlu0 %v498_v3  ;;  %461 = vset.pattern.permute.xlu1 %v498_v3  ;;  %v464_v4 = vld [vmem:[%s665_s0 + $0x10] sm:$0xff]  }
   0x2   :  { %442 = vmatprep.subr.msk.bf16.mxu0 %vm159_vm0, %v462_v0  ;;  %443 = vmatprep.subr.msk.bf16.mxu1 %vm159_vm0, %v462_v0  ;;  %v173_v2 = vsel %vm159_vm0, %v462_v0, 0  ;;  %v176_v5 = vsel %vm159_vm0, %v463_v1, 0  ;;  %v470_v6 = vld [vmem:[%s666_s1] sm:$0xff]   ;;  %v471_v7 = vld [vmem:[%s666_s1 + $0x10] sm:$0xff]   ;;  %v52_v10 = vld [vmem:[%s667_s2 + $0x8] sm:$0xff]  ;;  %v179_v12 = vsel %vm159_vm0, %v464_v4, 0 }
   0x3   :  { %403 = vmatpush3.bf16.xpose.msra.mxu0 %v173_v2  ;;  %434 = vmatpush3.bf16.xpose.msra.mxu1 %v173_v2  ;;  %v51_v8 = vld [vmem:[%s667_s2] sm:$0xff]  ;;  %v53_v9 = vld [vmem:[%s667_s2 + $0x10] sm:$0xff]  ;;  %v54_v11 = vld [vmem:[%s667_s2 + $0x18] sm:$0xff] }
   0x4   :  { %444 = vmatprep.subr.msk.bf16.mxu0 %vm159_vm0, %v463_v1  ;;  %445 = vmatprep.subr.msk.bf16.mxu1 %vm159_vm0, %v463_v1  ;;  %v465_v13 = vld [vmem:[%s665_s0 + $0x18] sm:$0xff]  }
   0x5   :  { %418 = vmatprep.mubr.msk.bf16.mxu0 %vm159_vm0, %v470_v6  ;;  %422 = vmatprep.mubr.msk.bf16.mxu1 %vm159_vm0, %v471_v7 }
   0x6   :  { %61 = vperm.xlu0 %460, %v51_v8   ;;  %71 = vperm.xlu1 %461, %v53_v9  }
   0xa   :  { %66 = vperm.xlu0 %460, %v52_v10  }
   0xb   :  { %405 = vmatpush3.bf16.xpose.msra.mxu0 %v176_v5  ;;  %435 = vmatpush3.bf16.xpose.msra.mxu1 %v176_v5 }
   0xc   :  { %446 = vmatprep.subr.msk.bf16.mxu0 %vm159_vm0, %v464_v4  ;;  %447 = vmatprep.subr.msk.bf16.mxu1 %vm159_vm0, %v464_v4 }
   0xd   :  { %13 = vsyncpa [#allocation5], 0  ;;  %76 = vperm.xlu1 %461, %v54_v11   ;;  %v287_v14 = vld [vmem:[%s669_s4] sm:$0xff]  ;;  %v288_v15 = vld [vmem:[%s669_s4 + $0x8] sm:$0xff]  ;;  %v182_v18 = vsel %vm159_vm0, %v465_v13, 0  ;;  %v270_v50 = vstv %s668_s3  ;;  %s499_s28 = smov [#allocation4]  }
   0xe   :  { %297 = vperm.xlu0 %460, %v287_v14   ;;  %v55_v16 = vld [vmem:[%s667_s2 + $0x20] sm:$0xff]  ;;  %v289_v17 = vld [vmem:[%s669_s4 + $0x10] sm:$0xff]  ;;  %v56_v20 = vld [vmem:[%s667_s2 + $0x28] sm:$0xff]  ;;  %s366_s29 = sshll.u32 %s499_s28, 4  ;;  %s367_s29 = int_to_ptr.vmem [resolvable:$true] %s366_s29 }
   0xf   :  { %v466_v19 = vld [vmem:[%s665_s0 + $0x20] sm:$0xff]   ;;  %v290_v21 = vld [vmem:[%s669_s4 + $0x18] sm:$0xff]  ;;  %v57_v22 = vld [vmem:[%s667_s2 + $0x30] sm:$0xff]  ;;  %s474_s30 = scalar_lea.vmem %s367_s29, 16  ;;  %s478_s7 = scalar_lea.vmem %s367_s29, 32 }
  0x10   :  { %v291_v23 = vld [vmem:[%s669_s4 + $0x20] sm:$0xff]  ;;  %v185_v24 = vsel %vm159_vm0, %v466_v19, 0  ;;  %v467_v25 = vld [vmem:[%s665_s0 + $0x28] sm:$0xff]   ;;  %v58_v26 = vld [vmem:[%s667_s2 + $0x38] sm:$0xff]  ;;  %p475_p0 = scmp.ne.s32.totalorder %s367_s29, %s474_s30  ;;  %p479_p1 = scmp.lt.s32.totalorder %s367_s29, %s367_s29 }
  0x11   :  { %302 = vperm.xlu1 %461, %v288_v15   ;;  %v292_v27 = vld [vmem:[%s669_s4 + $0x28] sm:$0xff]  ;;  %v293_v28 = vld [vmem:[%s669_s4 + $0x30] sm:$0xff]  ;;  %v294_v29 = vld [vmem:[%s669_s4 + $0x38] sm:$0xff]  ;;  %v188_v30 = vsel %vm159_vm0, %v467_v25, 0  ;;  %p480_p2 = scmp.lt.s32.totalorder %s478_s7, %s474_s30 }
  0x12   :  { %81 = vperm.xlu0 %460, %v55_v16   ;;  %v468_v31 = vld [vmem:[%s665_s0 + $0x30] sm:$0xff]   ;;  %v469_v33 = vld [vmem:[%s665_s0 + $0x38] sm:$0xff]   ;;  %v472_v35 = vld [vmem:[%s666_s1 + $0x8] sm:$0xff]  }
  0x13   :  { %407 = vmatpush3.bf16.xpose.msra.mxu0 %v179_v12  ;;  %436 = vmatpush3.bf16.xpose.msra.mxu1 %v179_v12  ;;  %v191_v32 = vsel %vm159_vm0, %v468_v31, 0  ;;  %v194_v34 = vsel %vm159_vm0, %v469_v33, 0  ;;  %v473_v36 = vld [vmem:[%s666_s1 + $0x18] sm:$0xff]   ;;  %p481_p3 = por %p480_p2, %p479_p1 }
  0x14   :  { %448 = vmatprep.subr.msk.bf16.mxu0 %vm159_vm0, %v465_v13  ;;  %449 = vmatprep.subr.msk.bf16.mxu1 %vm159_vm0, %v465_v13 }
  0x15   :  { %307 = vperm.xlu1 %461, %v289_v17   ;;  %p482_p4 = pnand %p481_p3, %p475_p0 }
  0x16   :  { %86 = vperm.xlu0 %460, %v56_v20  }
  0x19   :  { %312 = vperm.xlu1 %461, %v290_v21  }
  0x1a   :  { %91 = vperm.xlu0 %460, %v57_v22  }
  0x1b   :  { %409 = vmatpush3.bf16.xpose.msra.mxu0 %v182_v18  ;;  %437 = vmatpush3.bf16.xpose.msra.mxu1 %v182_v18 }
  0x1c   :  { %450 = vmatprep.subr.msk.bf16.mxu0 %vm159_vm0, %v466_v19  ;;  %451 = vmatprep.subr.msk.bf16.mxu1 %vm159_vm0, %v466_v19 }
  0x1d   :  { %317 = vperm.xlu1 %461, %v291_v23  }
  0x1e   :  { %96 = vperm.xlu0 %460, %v58_v26  }
  0x21   :  { %322 = vperm.xlu1 %461, %v292_v27  }
  0x22   :  { %327 = vperm.xlu0 %460, %v293_v28  }
  0x23   :  { %411 = vmatpush3.bf16.xpose.msra.mxu0 %v185_v24  ;;  %438 = vmatpush3.bf16.xpose.msra.mxu1 %v185_v24 }
  0x24   :  { %452 = vmatprep.subr.msk.bf16.mxu0 %vm159_vm0, %v467_v25  ;;  %453 = vmatprep.subr.msk.bf16.mxu1 %vm159_vm0, %v467_v25 }
  0x25   :  { %332 = vperm.xlu1 %461, %v294_v29  }
  0x2b   :  { %413 = vmatpush3.bf16.xpose.msra.mxu0 %v188_v30  ;;  %439 = vmatpush3.bf16.xpose.msra.mxu1 %v188_v30 }
  0x2c   :  { %454 = vmatprep.subr.msk.bf16.mxu0 %vm159_vm0, %v468_v31  ;;  %455 = vmatprep.subr.msk.bf16.mxu1 %vm159_vm0, %v468_v31 }
  0x33   :  { %415 = vmatpush3.bf16.xpose.msra.mxu0 %v191_v32  ;;  %440 = vmatpush3.bf16.xpose.msra.mxu1 %v191_v32 }
  0x34   :  { %456 = vmatprep.subr.msk.bf16.mxu0 %vm159_vm0, %v469_v33  ;;  %457 = vmatprep.subr.msk.bf16.mxu1 %vm159_vm0, %v469_v33 }
  0x3b   :  { %417 = vmatpush3.bf16.xpose.msra.mxu0 %v194_v34  ;;  %441 = vmatpush3.bf16.xpose.msra.mxu1 %v194_v34 }
  0x42   :  { %419 = vmatmul.mubr.msk.bf16.vlgmr.msra.gmra.mrb[0].mxu0 %vm159_vm0, %v472_v35  ;;  %423 = vmatmul.mubr.msk.bf16.vlgmr.msra.gmra.mrb[0].mxu1 %vm159_vm0, %v473_v36 }
  0x85   :  { %v62_v37 = vpop.permute.xlu0 %61  ;;  %v72_v38 = vpop.permute.xlu1 %71 }
  0x89   :  { %v67_v39 = vpop.permute.xlu0 %66 }
  0x8c   :  { %v77_v40 = vpop.permute.xlu1 %76 }
  0x8d   :  { %v298_v41 = vpop.permute.xlu0 %297 }
  0x90   :  { %v303_v42 = vpop.permute.xlu1 %302 }
  0x91   :  { %v82_v43 = vpop.permute.xlu0 %81 }
  0x94   :  { %v308_v44 = vpop.permute.xlu1 %307 }
  0x95   :  { %v87_v45 = vpop.permute.xlu0 %86 }
  0x98   :  { %v313_v58 = vpop.permute.xlu1 %312 }
  0x99   :  { %v92_v60 = vpop.permute.xlu0 %91 }
  0x9c   :  { %v318_v4 = vpop.permute.xlu1 %317 }
  0x9d   :  { %v97_v9 = vpop.permute.xlu0 %96 }
  0xa0   :  { %v323_v21 = vpop.permute.xlu1 %322 }
  0xa1   :  { %v328_v29 = vpop.permute.xlu0 %327 }
  0xa4   :  { %v333_v33 = vpop.permute.xlu1 %332 }
 0x115   :  { %v420_v46 = vpop.f32.mrb[0].mxu0  ;;  %v424_v47 = vpop.f32.mrb[0].mxu1 }
 0x116   :  { %v230_v48 = vpop.f32.mrb[1].mxu0  ;;  %v246_v49 = vpop.f32.mrb[1].mxu1  ;;  %v239_v56 = vadd.f32 %v420_v46, %v72_v38  ;;  %v255_v6 = vadd.f32 %v424_v47, %v92_v60 }
 0x117   :  { %v231_v51 = vadd.f32 %v230_v48, %v62_v37  ;;  %v421_v52 = vpop.f32.mrb[2].mxu0  ;;  %v425_v53 = vpop.f32.mrb[2].mxu1  ;;  %v247_v62 = vadd.f32 %v246_v49, %v82_v43 }
 0x118   :  { %v233_v54 = vpop.f32.mrb[3].mxu0  ;;  %v249_v55 = vpop.f32.mrb[3].mxu1  ;;  %v242_v59 = vadd.f32 %v421_v52, %v77_v40  ;;  %v273_v61 = vmul.f32 %v270_v50, %v239_v56  ;;  %vm264_vm2 = vcmp.gt.f32.partialorder %v239_v56, 0.0  ;;  %v258_v13 = vadd.f32 %v425_v53, %v97_v9 }
 0x119   :  { %v271_v57 = vmul.f32 %v270_v50, %v231_v51  ;;  %vm262_vm1 = vcmp.gt.f32.partialorder %v231_v51, 0.0  ;;  %v234_v63 = vadd.f32 %v233_v54, %v67_v39  ;;  %v250_v3 = vadd.f32 %v249_v55, %v87_v45 }
 0x11a   :  { %v274_v1 = vmul.f32 %v270_v50, %v242_v59  ;;  %vm265_vm4 = vcmp.gt.f32.partialorder %v242_v59, 0.0  ;;  %v281_v5 = vsel %vm264_vm2, %v239_v56, %v273_v61  ;;  %v275_v7 = vmul.f32 %v270_v50, %v247_v62 }
 0x11b   :  { %v279_v0 = vsel %vm262_vm1, %v231_v51, %v271_v57  ;;  %vm263_vm3 = vcmp.gt.f32.partialorder %v234_v63, 0.0  ;;  %v272_v2 = vmul.f32 %v270_v50, %v234_v63  ;;  %vm266_vm5 = vcmp.gt.f32.partialorder %v247_v62, 0.0 }
 0x11c   :  { %v335_v10 = vmul.f32 %v298_v41, %v279_v0  ;;  %v282_v12 = vsel %vm265_vm4, %v242_v59, %v274_v1  ;;  %v276_v14 = vmul.f32 %v270_v50, %v250_v3  ;;  %v337_v15 = vmul.f32 %v308_v44, %v281_v5 }
 0x11d   :  { %v280_v8 = vsel %vm263_vm3, %v234_v63, %v272_v2  ;;  %vm267_vm6 = vcmp.gt.f32.partialorder %v250_v3, 0.0  ;;  %v277_v17 = vmul.f32 %v270_v50, %v255_v6  ;;  %v283_v18 = vsel %vm266_vm5, %v247_v62, %v275_v7 }
 0x11e   :  { %v336_v11 = vmul.f32 %v303_v42, %v280_v8  ;;  %vm268_vm7 = vcmp.gt.f32.partialorder %v255_v6, 0.0  ;;  %v338_v19 = vmul.f32 %v313_v58, %v282_v12  ;;  %v278_v22 = vmul.f32 %v270_v50, %v258_v13 }
 0x11f   :  { %v284_v23 = vsel %vm267_vm6, %v250_v3, %v276_v14  ;;  %v339_v24 = vmul.f32 %v318_v4, %v283_v18  ;;  %vm269_vm8 = vcmp.gt.f32.partialorder %v258_v13, 0.0  ;;  %v285_v26 = vsel %vm268_vm7, %v255_v6, %v277_v17 }
 0x120   :  { %v343_v16 = vadd.f32 %v336_v11, %v335_v10  ;;  %v340_v27 = vmul.f32 %v323_v21, %v284_v23  ;;  %v286_v30 = vsel %vm269_vm8, %v258_v13, %v278_v22  ;;  %v341_v31 = vmul.f32 %v328_v29, %v285_v26 }
 0x121   :  { %v342_v34 = vmul.f32 %v333_v33, %v286_v30  ;;  %v357_v42 = vstv %s670_s5 }
 0x122   :  { %v344_v20 = vadd.f32 %v343_v16, %v337_v15 }
 0x124   :  { %v345_v25 = vadd.f32 %v344_v20, %v338_v19 }
 0x126   :  { %v346_v28 = vadd.f32 %v345_v25, %v339_v24 }
 0x128   :  { %v347_v32 = vadd.f32 %v346_v28, %v340_v27 }
 0x12a   :  { %v348_v35 = vadd.f32 %v347_v32, %v341_v31 }
 0x12c   :  { %v349_v36 = vadd.f32 %v348_v35, %v342_v34 }
 0x12e   :  { %v350_v37 = vrot.slane %v349_v36, 4 }
 0x130   :  { %v351_v38 = vadd.f32 %v350_v37, %v349_v36 }
 0x132   :  { %v352_v39 = vrot.slane %v351_v38, 2 }
 0x134   :  { %v353_v40 = vadd.f32 %v352_v39, %v351_v38 }
 0x136   :  { %v354_v41 = vrot.slane %v353_v40, 1 }
 0x138   :  { %v355_v43 = vadd.f32 %v354_v41, %v353_v40 }
 0x13a   :  { %v358_v44 = vadd.f32 %v357_v42, %v355_v43 }
 0x13c   :  { %359 = vst [vmem:[#allocation4] sm:$0x1] %v358_v44 }
 0x13d   :  { %485 = shalt.err (!%p482_p4)
}
 0x13e   :  { %s486_s10 = scalar_lea.hbm %s671_s6, 16 }
 0x13f   :  { %p487_p5 = scmp.ne.s32.totalorder %s671_s6, %s486_s10  ;;  %p490_p6 = scmp.lt.u32.totalorder %s486_s10, %s671_s6 }
 0x141   :  { %p492_p7 = pnand %p490_p6, %p487_p5 }
 0x143   :  { %495 = shalt.err (!%p492_p7)
}
 0x144   :  { %369 = dma.vmem_to_hbm [thread:$0]  %s367_s29, 16, %s671_s6, [#allocation5]  }
 0x145   :  { %496 = dma.done.wait [#allocation5], 16  }
 0x146   :  { %497 = vsyncadd [#allocation5], 4294967280 }
 0x147   :  { %373 = vsyncpa [#allocation5], 1 }

</bundles_post_ra>
